<compile_context>
chip_gen: v7x
topology: tpu7x:2x2x1
jax: 0.10.0
libtpu: 0.0.40
codegen_flags: <defaults>
</compile_context>

<pallas_src>
import jax
import jax.numpy as jnp
from jax.experimental import pallas as pl
from jax.experimental.pallas import tpu as pltpu

_LANES = 128
_MIN_BLOCKS = 8            # min pipeline steps for medium inputs (DMA overlap + 2-TC split)
_SMALL_BYTES = 256 * 1024  # below this, a single block is fine (step overhead negligible)


def _relu_kernel(x_ref, o_ref):
    # Pure VPU elementwise hot path: ReLU on the VMEM tile.
    o_ref[...] = jnp.maximum(x_ref[...], jnp.zeros((), dtype=x_ref.dtype))


def _sublane_multiple(dtype) -> int:
    """Minimum sublane tile multiple for a dtype (packed dtypes pack along sublanes)."""
    itemsize = jnp.dtype(dtype).itemsize
    if itemsize >= 4:
        return 8
    if itemsize == 2:
        return 16
    return 32


def _default_tile_bytes() -> int:
    """Per-buffer streaming tile target.

    v7x (64 MiB VMEM/TC, ~3.2 TB/s HBM) wants bigger steps so the fixed
    ~0.35 us grid-step overhead stays small relative to the DMA time;
    v5e/v6e (128 MiB VMEM, slower HBM) are fine at 4 MiB.
    """
    try:
        vmem = pltpu.get_tpu_info().vmem_capacity_bytes
        if vmem <= 64 * 1024 * 1024:
            return 6 * 1024 * 1024
    except Exception:
        pass
    return 4 * 1024 * 1024


def _round_up(v: int, m: int) -> int:
    return ((v + m - 1) // m) * m


def relu_pallas(
    x: jax.Array,
    *,
    target_tile_bytes: int | None = None,
    vmem_limit_bytes: int = 48 * 1024 * 1024,
) -> jax.Array:
    """ReLU via a Pallas TPU kernel. Matches torch nn.ReLU()(x) semantics."""
    orig_shape = x.shape
    dtype = x.dtype
    total = x.size
    if total == 0:
        return x
    if target_tile_bytes is None:
        target_tile_bytes = _default_tile_bytes()

    itemsize = jnp.dtype(dtype).itemsize
    sub = _sublane_multiple(dtype)

    flat = x.reshape(-1)
    # Pad only when the element count is not a multiple of the 128-lane width.
    # A ragged ROW count needs no padding: (tr, 128) blocks with tr a multiple
    # of the dtype sublane count satisfy the tiling constraint and the ragged
    # last grid block is masked by Pallas (safe for this elementwise op).
    padded_total = _round_up(total, _LANES)
    needs_pad = padded_total != total
    if needs_pad:
        # relu(0) == 0, so zero padding is semantically inert.
        # TODO(synk): eliminate the extra HBM read+write of this copy by masking
        # the ragged tail inside the kernel (1-D blocks or scalar-prefetched
        # `total` + masked pltpu.store) instead of materializing a padded input.
        flat = jnp.concatenate(
            [flat, jnp.zeros((padded_total - total,), dtype=dtype)]
        )

    rows = padded_total // _LANES
    x2d = flat.reshape(rows, _LANES)
    stream_bytes = padded_total * itemsize

    # ---- rows per tile -------------------------------------------------------
    tr = max(target_tile_bytes // (_LANES * itemsize), sub)
    tr = (tr // sub) * sub
    if stream_bytes > _SMALL_BYTES:
        # Force at least _MIN_BLOCKS grid steps: recovers in/out DMA overlap for
        # medium inputs and lets both v7x TensorCores run the streaming loop.
        tr_cap = max(sub, _round_up(pl.cdiv(rows, _MIN_BLOCKS), sub))
        tr = min(tr, tr_cap)
    if tr >= rows:
        tr = rows  # single full-extent block (full-dim block shape is always legal)
    grid = (pl.cdiv(rows, tr),)  # ragged last block masked by Pallas

    cost = pl.CostEstimate(
        flops=total,
        transcendentals=0,
        bytes_accessed=2 * total * itemsize,
    )

    def build(dim_sem, in_buffers):
        in_kwargs = {}
        if in_buffers != 2:
            in_kwargs["pipeline_mode"] = pl.Buffered(in_buffers)
        return pl.pallas_call(
            _relu_kernel,
            out_shape=jax.ShapeDtypeStruct((rows, _LANES), dtype),
            grid=grid,
            in_specs=[pl.BlockSpec((tr, _LANES), lambda i: (i, 0), **in_kwargs)],
            out_specs=pl.BlockSpec((tr, _LANES), lambda i: (i, 0)),
            compiler_params=pltpu.CompilerParams(
                dimension_semantics=dim_sem,
                vmem_limit_bytes=vmem_limit_bytes,
            ),
            cost_estimate=cost,
        )

    core_parallel = getattr(pltpu, "CORE_PARALLEL", pltpu.PARALLEL)
    if grid[0] > 1:
        # Preferred: shard the streaming axis across TensorCores (v7x has 2; a
        # single-TC chip just runs the whole loop) and triple-buffer the input
        # DMA stream. Degrade gracefully if either feature is rejected.
        attempts = (
            ((core_parallel,), 3),
            ((pltpu.PARALLEL,), 3),
            ((pltpu.PARALLEL,), 2),
        )
    else:
        attempts = (((pltpu.ARBITRARY,), 2),)

    out2d = None
    last_err = None
    for dim_sem, nbuf in attempts:
        try:
            out2d = build(dim_sem, nbuf)(x2d)
            break
        except Exception as e:  # lowering/compile rejection on this chip/version
            last_err = e
    if out2d is None:
        raise last_err

    out_flat = out2d.reshape(-1)
    if needs_pad:
        out_flat = out_flat[:total]
    return out_flat.reshape(orig_shape)


if __name__ == "__main__":
    key = jax.random.PRNGKey(0)

    # Primary check: NCHW activation, batch=2, channels=4, spatial=16x16 (f32).
    # 2048 elements -> no padding, single full-extent block.
    x = jax.random.normal(key, (2, 4, 16, 16), dtype=jnp.float32)
    y = relu_pallas(x)
    jax.block_until_ready(y)
    y_ref = jnp.maximum(x, 0.0)
    assert y.shape == x.shape and y.dtype == x.dtype
    assert bool(jnp.allclose(y, y_ref)), "mismatch vs reference ReLU (no-pad path)"

    # Multi-block path (grid > 1): exercises the CORE_PARALLEL / Buffered(3)
    # ladder and the masked ragged-row handling.
    k2 = jax.random.fold_in(key, 1)
    x2 = jax.random.normal(k2, (2, 8, 32, 32), dtype=jnp.float32)
    y2 = relu_pallas(x2, target_tile_bytes=16 * 1024)
    jax.block_until_ready(y2)
    assert bool(jnp.allclose(y2, jnp.maximum(x2, 0.0))), "mismatch (multi-block path)"

    # Ragged / padded path: element count not a multiple of 128.
    k3 = jax.random.fold_in(key, 2)
    x3 = jax.random.normal(k3, (3, 5, 7, 11), dtype=jnp.float32)
    y3 = relu_pallas(x3)
    jax.block_until_ready(y3)
    assert bool(jnp.allclose(y3, jnp.maximum(x3, 0.0))), "mismatch (padded path)"

    print("KERNEL_OK")
</pallas_src>

<mosaic_0001>
module attributes {stable_mosaic.version = 11 : i64} {
  func.func @_relu_kernel(%arg0: i32, %arg1: memref<16x128xf32, #tpu.memory_space<vmem>>, %arg2: memref<16x128xf32, #tpu.memory_space<vmem>>) attributes {dimension_semantics = [#tpu.dimension_semantics<arbitrary>], iteration_bounds = array<i64: 1>, scalar_prefetch = 0 : i64, scratch_operands = 0 : i64, tpu.core_type = #tpu.core_type<tc>, window_params = [{transform_indices = @transform_0, window_bounds = array<i64: 16, 128>}, {transform_indices = @transform_1, window_bounds = array<i64: 16, 128>}]} {
    %c0 = arith.constant 0 : index
    %c0_0 = arith.constant 0 : index
    %0 = vector.load %arg1[%c0, %c0_0] : memref<16x128xf32, #tpu.memory_space<vmem>>, vector<16x128xf32>
    %cst = arith.constant 0.000000e+00 : f32
    %1 = vector.broadcast %cst : f32 to vector<16x128xf32>
    %2 = arith.maximumf %0, %1 : vector<16x128xf32>
    %c0_1 = arith.constant 0 : index
    %c0_2 = arith.constant 0 : index
    %3 = vector.load %arg2[%c0_1, %c0_2] : memref<16x128xf32, #tpu.memory_space<vmem>>, vector<16x128xf32>
    tpu.vector_store %arg2[%c0_1, %c0_2], %2 {strides = array<i32>} : memref<16x128xf32, #tpu.memory_space<vmem>>, vector<16x128xf32>,
    return
  }
  func.func @transform_0(%arg0: i32) -> (i32, i32) {
    %c0_i32 = arith.constant 0 : i32
    %c0_i32_0 = arith.constant 0 : i32
    return %arg0, %c0_i32 : i32, i32
  }
  func.func @transform_1(%arg0: i32) -> (i32, i32) {
    %c0_i32 = arith.constant 0 : i32
    %c0_i32_0 = arith.constant 0 : i32
    return %arg0, %c0_i32 : i32, i32
  }
}

</mosaic_0001>

<bundles_post_ra>
// kernel: tpu_custom_call.1
= control target key start
LH: loop header
LB: loop body
LE: loop exit
PB: predicated region body
PF: predicated region fallthrough
CT: control target
= control target key end

     0   :  { %6 = vsyncpa [#allocation3], 0  ;;  %s136_s0 = inlined_call_operand.hbm [shape: f32[16,128], index: 0, kind: input, shape index: {}]   ;;  %s137_s1 = inlined_call_operand.hbm [shape: f32[16,128], index: 1, kind: output, shape index: {}]  }
   0x1   :  { %7 = vsyncpa [#allocation4], 0  ;;  %s98_s6 = smov [#allocation2]   ;;  %s50_s10 = scalar_lea.hbm %s136_s0, 256 }
   0x2   :  { %s13_s7 = sshll.u32 %s98_s6, 4  ;;  %p51_p0 = scmp.ne.s32.totalorder %s136_s0, %s50_s10  ;;  %s14_s7 = int_to_ptr.vmem [resolvable:$true] %s13_s7 }
   0x3   :  { %p54_p1 = scmp.lt.u32.totalorder %s50_s10, %s136_s0 }
   0x5   :  { %p56_p2 = pnand %p54_p1, %p51_p0 }
   0x7   :  { %59 = shalt.err (!%p56_p2)
}
   0x8   :  { %s60_s15 = scalar_lea.vmem %s14_s7, 256  ;;  %p65_p4 = scmp.lt.s32.totalorder %s14_s7, %s14_s7 }
   0x9   :  { %p61_p3 = scmp.ne.s32.totalorder %s14_s7, %s60_s15  ;;  %p66_p5 = scmp.lt.s32.totalorder %s60_s15, %s60_s15 }
   0xb   :  { %p67_p6 = por %p66_p5, %p65_p4 }
   0xd   :  { %p68_p7 = pnand %p67_p6, %p61_p3 }
   0xf   :  { %71 = shalt.err (!%p68_p7)
}
  0x10   :  { %s99_s16 = smov 128   ;;  %s100_s17 = smov 8  }
  0x11   :  { %19 = dma.hbm_to_vmem [thread:$0]  %s136_s0, 256, %s14_s7, [#allocation3], %s99_s16, %s99_s16, %s100_s17  }
  0x12   :  { %94 = dma.done.wait [#allocation3], 256  }
  0x13   :  { %95 = vsyncadd [#allocation3], 4294967040  ;;  %s101_s20 = smov [#allocation5]   ;;  %v23_v0 = vld [vmem:[#allocation2] sm:$0xff]  ;;  %v24_v1 = vld [vmem:[#allocation2 + $0x8] sm:$0xff] }
  0x14   :  { %s34_s21 = sshll.u32 %s101_s20, 4  ;;  %v25_v2 = vmax.f32 %v23_v0, 0.0  ;;  %v26_v3 = vmax.f32 %v24_v1, 0.0  ;;  %s35_s21 = int_to_ptr.vmem [resolvable:$true] %s34_s21 }
  0x15   :  { %s72_s22 = scalar_lea.vmem %s35_s21, 256  ;;  %p77_p9 = scmp.lt.s32.totalorder %s35_s21, %s35_s21 }
  0x16   :  { %27 = vst [vmem:[#allocation5] sm:$0xff] %v25_v2  ;;  %28 = vst [vmem:[#allocation5 + $0x8] sm:$0xff] %v26_v3  ;;  %p73_p8 = scmp.ne.s32.totalorder %s35_s21, %s72_s22  ;;  %p78_p10 = scmp.lt.s32.totalorder %s72_s22, %s72_s22 }
  0x18   :  { %p79_p11 = por %p78_p10, %p77_p9 }
  0x1a   :  { %p80_p12 = pnand %p79_p11, %p73_p8 }
  0x1c   :  { %83 = shalt.err (!%p80_p12)
}
  0x1d   :  { %s84_s24 = scalar_lea.hbm %s137_s1, 256 }
  0x1e   :  { %p85_p13 = scmp.ne.s32.totalorder %s137_s1, %s84_s24  ;;  %p88_p0 = scmp.lt.u32.totalorder %s84_s24, %s137_s1 }
  0x20   :  { %p90_p1 = pnand %p88_p0, %p85_p13 }
  0x22   :  { %93 = shalt.err (!%p90_p1)
}
  0x23   :  { %40 = dma.vmem_to_hbm [thread:$0]  %s35_s21, 256, %s137_s1, [#allocation4], %s99_s16, %s99_s16, %s100_s17  }
  0x24   :  { %96 = dma.done.wait [#allocation4], 256  }
  0x25   :  { %97 = vsyncadd [#allocation4], 4294967040 }
  0x26   :  { %44 = vsyncpa [#allocation3], 1 }
  0x27   :  { %45 = vsyncpa [#allocation4], 1 }

</bundles_post_ra>
